<compile_context>
chip_gen: v7x
topology: tpu7x:2x2x1
jax: 0.10.0
libtpu: 0.0.40
codegen_flags: <defaults>
</compile_context>

<pallas_src>
import numpy as np
import jax
import jax.numpy as jnp
from jax.experimental import pallas as pl
from jax.experimental.pallas import tpu as pltpu


def _round_up(x, m):
    return ((x + m - 1) // m) * m


# ----------------------------------------------------------------------------------
# Pallas kernel: one block of `wb` consecutive windows of one example.
#   xa : (1, SB, C)   current slab of the padded sequence (SB = wb * stride rows)
#   xo : (1, OV8, C)  the overlap rows spilling past this slab (window tails)
#   ma : (SB, SB), mb : (SB, OV8)  banded temporal-mixing matrices (prediction rows)
#   out: (1, SB, NCP) fused [start | char | pad] logits, lane-dense (NCP % 128 == 0)
# ----------------------------------------------------------------------------------
def _make_decoder_kernel(compute_dtype):
    def kernel(xa_ref, xo_ref, w1_ref, b1_ref, wh_ref, bh_ref, ma_ref, mb_ref, out_ref):
        w1 = w1_ref[...]          # (C, H)
        b1 = b1_ref[...]          # (1, H)   f32
        wh = wh_ref[...]          # (H, NCP) fused heads

        # Per-timestep projection + ReLU + fused heads for this block's rows
        # (flat M = SB rows -> fills the MXU instead of per-window M = W matmuls).
        xa = xa_ref[0]                                                     # (SB, C)
        ha = jnp.maximum(
            jnp.dot(xa, w1, preferred_element_type=jnp.float32) + b1, 0.0)  # (SB, H) f32
        ga = jnp.dot(ha.astype(compute_dtype), wh,
                     preferred_element_type=jnp.float32)                    # (SB, NCP)

        # ... and for the few overlap rows that spill past this slab.
        xo = xo_ref[0]                                                     # (OV8, C)
        ho = jnp.maximum(
            jnp.dot(xo, w1, preferred_element_type=jnp.float32) + b1, 0.0)
        go = jnp.dot(ho.astype(compute_dtype), wh,
                     preferred_element_type=jnp.float32)                    # (OV8, NCP)

        # Banded temporal mixing restricted to each window's prediction rows.
        # (Band sparsity is carried as explicit zeros; fine at SB ~ O(1e3).)
        out = (jnp.dot(ma_ref[...], ga.astype(compute_dtype),
                       preferred_element_type=jnp.float32)
               + jnp.dot(mb_ref[...], go.astype(compute_dtype),
                         preferred_element_type=jnp.float32)
               + bh_ref[...])                                              # (SB, NCP)
        out_ref[...] = out[None, :, :]

    return kernel


# ----------------------------------------------------------------------------------
# SlidingWindowDecoder glue — mirrors the torch module's padding / slicing / trimming.
# ----------------------------------------------------------------------------------
class SlidingWindowDecoderPallas:
    def __init__(self, params, *, window_size, stride=1, prediction_start=0.5,
                 batch_size=256, compute_dtype=jnp.float32):
        self.window_size = window_size
        self.stride = stride
        self.batch_size = batch_size            # windows per kernel grid step
        self.compute_dtype = compute_dtype
        self.prediction_start = self._coerce_to_integer_index(prediction_start)
        self.prediction_end = self.prediction_start + stride
        assert self.prediction_end <= window_size, \
            "prediction window must fit inside the model window"

        w1, b1, t, ws, bs, wc, bc = params
        self.C, self.H = w1.shape
        self.NC = wc.shape[1]

        # Fused head: column 0 = start-logit head, columns 1..NC = character head,
        # zero-padded to a multiple of 128 lanes so output stores are lane-dense.
        self.NCP = _round_up(1 + self.NC, 128)
        w_heads = np.zeros((self.H, self.NCP), dtype=np.float32)
        w_heads[:, 0] = np.asarray(ws)[:, 0]
        w_heads[:, 1:1 + self.NC] = np.asarray(wc)
        b_heads = np.zeros((1, self.NCP), dtype=np.float32)
        b_heads[0, 0] = np.asarray(bs)[0, 0]
        b_heads[0, 1:1 + self.NC] = np.asarray(bc)[0]

        # Only the prediction rows of the temporal mixing matrix are ever needed.
        self.t_pred = np.asarray(t)[self.prediction_start:self.prediction_end, :]

        self.w1 = jnp.asarray(np.asarray(w1), dtype=compute_dtype)
        self.b1 = jnp.asarray(np.asarray(b1), dtype=jnp.float32)       # biases stay f32
        self.w_heads = jnp.asarray(w_heads, dtype=compute_dtype)
        self.b_heads = jnp.asarray(b_heads, dtype=jnp.float32)

    # ---- same index math as the torch module ------------------------------------
    def _coerce_to_integer_index(self, x):
        if isinstance(x, float):
            if x < 0 or x > 1:
                raise ValueError("float prediction_start must be in [0,1]")
            return int(np.floor(x * self.window_size))
        if isinstance(x, int):
            if x < 0 or x >= self.window_size:
                raise ValueError("int prediction_start must be in [0, window_size)")
            return x
        raise ValueError("prediction_start must be float or int")

    def _get_padding(self, timesteps):
        first_end = self.prediction_end - self.prediction_start
        n_strides = int(np.ceil((timesteps - first_end) / self.stride))
        pad_end = (self.window_size + n_strides * self.stride
                   - self.prediction_start - timesteps)
        return (self.prediction_start, pad_end)

    # ---- forward ------------------------------------------------------------------
    def __call__(self, x):
        # x: (batch, timesteps, channels) -> (batch, timesteps), (batch, timesteps, NC)
        B, T, C = x.shape
        assert C == self.C
        W, stride = self.window_size, self.stride

        pad_front, pad_end = self._get_padding(T)
        seq_len = pad_front + T + pad_end                 # semantic padded length
        n_full = seq_len - W + 1
        n_windows = len(range(0, min(T, n_full), stride))

        # Windows per grid step: large by default, clamped to what exists, capped so
        # the banded mixing matrix stays small in VMEM, >= ceil(W/stride) so a single
        # slab (plus its small overlap tail) covers any window, and sublane aligned.
        wb = max(1, min(self.batch_size, n_windows))
        wb = min(wb, max(1, 1024 // stride))
        wb = max(wb, -(-W // stride))
        while (wb * stride) % 8:
            wb += 1
        n_blocks = -(-n_windows // wb)
        SB = wb * stride                                  # output rows per block
        overlap = W - stride                              # rows spilling past the slab
        OV8 = _round_up(max(overlap, 1), 8)               # padded overlap rows (<= SB)

        # Pad the time axis so every slab + overlap tail referenced below exists and
        # all real windows stay inside the buffer.
        T_pad = SB * max(n_blocks + 1, -(-seq_len // SB))
        x_pad = jnp.pad(x, ((0, 0), (pad_front, T_pad - pad_front - T), (0, 0)))
        x_pad = x_pad.astype(self.compute_dtype)

        # Small per-block overlap array: first OV8 rows of the *next* slab, one group
        # per block -> (B, n_blocks * OV8, C).  This is the only duplicated input data.
        x_body = x_pad[:, SB:(n_blocks + 1) * SB, :]
        x_ov = (x_body.reshape(B, n_blocks, SB, C)[:, :, :OV8, :]
                .reshape(B, n_blocks * OV8, C))

        # Banded mixing matrix: output row (k*stride + r) of a block is window k's
        # prediction row r, i.e. t_pred[r, :] applied to slab rows [k*stride, k*stride+W).
        full = np.zeros((SB, SB + OV8), dtype=np.float32)
        for k in range(wb):
            full[k * stride:(k + 1) * stride, k * stride:k * stride + W] = self.t_pred
        mmix_a = jnp.asarray(full[:, :SB], dtype=self.compute_dtype)        # (SB, SB)
        mmix_b = jnp.asarray(full[:, SB:SB + OV8], dtype=self.compute_dtype)  # (SB, OV8)

        kernel = _make_decoder_kernel(self.compute_dtype)
        const2 = lambda b, i: (0, 0)

        out = pl.pallas_call(
            kernel,
            out_shape=jax.ShapeDtypeStruct((B, n_blocks * SB, self.NCP), jnp.float32),
            grid=(B, n_blocks),
            in_specs=[
                pl.BlockSpec((1, SB, C), lambda b, i: (b, i, 0)),        # current slab
                pl.BlockSpec((1, OV8, C), lambda b, i: (b, i, 0)),       # overlap tail
                pl.BlockSpec((C, self.H), const2),                       # w1
                pl.BlockSpec((1, self.H), const2),                       # b1
                pl.BlockSpec((self.H, self.NCP), const2),                # fused heads
                pl.BlockSpec((1, self.NCP), const2),                     # fused head bias
                pl.BlockSpec((SB, SB), const2),                          # mixing (this slab)
                pl.BlockSpec((SB, OV8), const2),                         # mixing (overlap)
            ],
            out_specs=pl.BlockSpec((1, SB, self.NCP), lambda b, i: (b, i, 0)),
            compiler_params=pltpu.CompilerParams(
                dimension_semantics=("parallel", "parallel"),
                vmem_limit_bytes=32 * 1024 * 1024),
        )(x_pad, x_ov, self.w1, self.b1, self.w_heads, self.b_heads, mmix_a, mmix_b)

        # Split fused heads and trim: one prediction per original timestep.
        logits_start = out[:, :T, 0]
        logits_char = out[:, :T, 1:1 + self.NC]
        return logits_start, logits_char


# ----------------------------------------------------------------------------------
# Pure-JAX reference with the ORIGINAL per-window semantics (for correctness check).
# ----------------------------------------------------------------------------------
def _reference_forward(x, params, *, window_size, stride, prediction_start):
    w1, b1, t, ws, bs, wc, bc = params
    W = window_size
    B, T, C = x.shape
    pred_start = prediction_start
    pred_end = pred_start + stride
    first_end = pred_end - pred_start
    n_strides = int(np.ceil((T - first_end) / stride))
    pad_end = W + n_strides * stride - pred_start - T

    ls_all, lc_all = [], []
    for b in range(B):
        xb = np.asarray(x[b])
        x_pad = np.pad(xb, ((pred_start, pad_end), (0, 0)))
        n_full = x_pad.shape[0] - W + 1
        n_windows = len(range(0, min(T, n_full), stride))
        starts = np.arange(n_windows) * stride
        idx = starts[:, None] + np.arange(W)[None, :]
        win = jnp.asarray(x_pad[idx])                                    # (n_win, W, C)
        h = jnp.maximum(jnp.einsum('kwc,ch->kwh', win, w1) + b1[None], 0.0)
        mixed = jnp.einsum('kwh,tw->kth', h, t)
        ls = jnp.einsum('kth,ho->kto', mixed, ws)[..., 0] + bs[0, 0]      # (n_win, W)
        lc = jnp.einsum('kth,ho->kto', mixed, wc) + bc[None]              # (n_win, W, NC)
        ls = ls[:, pred_start:pred_end].reshape(-1)[:T]
        lc = lc[:, pred_start:pred_end].reshape(-1, lc.shape[-1])[:T]
        ls_all.append(ls)
        lc_all.append(lc)
    return jnp.stack(ls_all, axis=0), jnp.stack(lc_all, axis=0)


if __name__ == "__main__":
    BATCH = 2          # sentences
    TIMESTEPS = 16     # timesteps per sentence
    CHANNELS = 4       # neural channels
    WINDOW = 8         # window_size (decoder sequence length)
    STRIDE = 4
    HIDDEN = 32
    N_CHAR = 16

    key = jax.random.PRNGKey(0)
    kx, k1, k2, k3, k4, k5, k6, k7 = jax.random.split(key, 8)

    x = jax.random.normal(kx, (BATCH, TIMESTEPS, CHANNELS), dtype=jnp.float32)
    params = (
        0.2 * jax.random.normal(k1, (CHANNELS, HIDDEN), dtype=jnp.float32),   # w1
        0.1 * jax.random.normal(k2, (1, HIDDEN), dtype=jnp.float32),          # b1
        0.2 * jax.random.normal(k3, (WINDOW, WINDOW), dtype=jnp.float32),     # temporal mix
        0.2 * jax.random.normal(k4, (HIDDEN, 1), dtype=jnp.float32),          # w_start
        0.1 * jax.random.normal(k5, (1, 1), dtype=jnp.float32),               # b_start
        0.2 * jax.random.normal(k6, (HIDDEN, N_CHAR), dtype=jnp.float32),     # w_char
        0.1 * jax.random.normal(k7, (1, N_CHAR), dtype=jnp.float32),          # b_char
    )

    swd = SlidingWindowDecoderPallas(params, window_size=WINDOW, stride=STRIDE,
                                     prediction_start=0.5)   # default 256 windows/block
    logits_start, logits_char = swd(x)
    logits_start = jax.block_until_ready(logits_start)
    logits_char = jax.block_until_ready(logits_char)

    assert logits_start.shape == (BATCH, TIMESTEPS)
    assert logits_char.shape == (BATCH, TIMESTEPS, N_CHAR)

    ls_ref, lc_ref = _reference_forward(x, params, window_size=WINDOW, stride=STRIDE,
                                        prediction_start=swd.prediction_start)
    np.testing.assert_allclose(np.asarray(logits_start), np.asarray(ls_ref),
                               rtol=2e-3, atol=2e-3)
    np.testing.assert_allclose(np.asarray(logits_char), np.asarray(lc_ref),
                               rtol=2e-3, atol=2e-3)

    print("KERNEL_OK")
</pallas_src>

<mosaic_0001>
module attributes {stable_mosaic.version = 11 : i64} {
  func.func @kernel(%arg0: i32, %arg1: i32, %arg2: memref<1x16x4xf32, #tpu.memory_space<vmem>>, %arg3: memref<1x8x4xf32, #tpu.memory_space<vmem>>, %arg4: memref<4x32xf32, #tpu.memory_space<vmem>>, %arg5: memref<1x32xf32, #tpu.memory_space<vmem>>, %arg6: memref<32x128xf32, #tpu.memory_space<vmem>>, %arg7: memref<1x128xf32, #tpu.memory_space<vmem>>, %arg8: memref<16x16xf32, #tpu.memory_space<vmem>>, %arg9: memref<16x8xf32, #tpu.memory_space<vmem>>, %arg10: memref<1x16x128xf32, #tpu.memory_space<vmem>>) attributes {dimension_semantics = [#tpu.dimension_semantics<parallel>, #tpu.dimension_semantics<parallel>], iteration_bounds = array<i64: 2, 1>, scalar_prefetch = 0 : i64, scratch_operands = 0 : i64, tpu.core_type = #tpu.core_type<tc>, window_params = [{transform_indices = @transform_0, window_bounds = array<i64: 1, 16, 4>}, {transform_indices = @transform_1, window_bounds = array<i64: 1, 8, 4>}, {pipeline_mode = #tpu.pipeline_mode<synchronous>, transform_indices = @transform_2, window_bounds = array<i64: 4, 32>}, {pipeline_mode = #tpu.pipeline_mode<synchronous>, transform_indices = @transform_3, window_bounds = array<i64: 1, 32>}, {pipeline_mode = #tpu.pipeline_mode<synchronous>, transform_indices = @transform_4, window_bounds = array<i64: 32, 128>}, {pipeline_mode = #tpu.pipeline_mode<synchronous>, transform_indices = @transform_5, window_bounds = array<i64: 1, 128>}, {pipeline_mode = #tpu.pipeline_mode<synchronous>, transform_indices = @transform_6, window_bounds = array<i64: 16, 16>}, {pipeline_mode = #tpu.pipeline_mode<synchronous>, transform_indices = @transform_7, window_bounds = array<i64: 16, 8>}, {transform_indices = @transform_8, window_bounds = array<i64: 1, 16, 128>}]} {
    %c0 = arith.constant 0 : index
    %c0_0 = arith.constant 0 : index
    %0 = vector.load %arg4[%c0, %c0_0] : memref<4x32xf32, #tpu.memory_space<vmem>>, vector<4x32xf32>
    %c0_1 = arith.constant 0 : index
    %c0_2 = arith.constant 0 : index
    %1 = vector.load %arg5[%c0_1, %c0_2] : memref<1x32xf32, #tpu.memory_space<vmem>>, vector<1x32xf32>
    %c0_3 = arith.constant 0 : index
    %c0_4 = arith.constant 0 : index
    %2 = vector.load %arg6[%c0_3, %c0_4] : memref<32x128xf32, #tpu.memory_space<vmem>>, vector<32x128xf32>
    %c0_5 = arith.constant 0 : index
    %c0_6 = arith.constant 0 : index
    %c0_7 = arith.constant 0 : index
    %3 = vector.load %arg2[%c0_5, %c0_6, %c0_7] : memref<1x16x4xf32, #tpu.memory_space<vmem>>, vector<1x16x4xf32>
    %4 = vector.shape_cast %3 : vector<1x16x4xf32> to vector<16x4xf32>
    %cst = arith.constant dense<0.000000e+00> : vector<16x32xf32>
    %5 = tpu.matmul %4, %0, %cst {dimension_numbers = #tpu.dot_dimension_numbers<[1], [0], [0], [1], [0, 0, 1, 1], [], []>} : vector<16x4xf32>, vector<4x32xf32>, vector<16x32xf32> -> vector<16x32xf32>
    %6 = vector.broadcast %1 : vector<1x32xf32> to vector<16x32xf32>
    %7 = arith.addf %5, %6 : vector<16x32xf32>
    %cst_8 = arith.constant 0.000000e+00 : f32
    %8 = vector.broadcast %cst_8 : f32 to vector<16x32xf32>
    %9 = arith.maximumf %7, %8 : vector<16x32xf32>
    %cst_9 = arith.constant dense<0.000000e+00> : vector<16x128xf32>
    %10 = tpu.matmul %9, %2, %cst_9 {dimension_numbers = #tpu.dot_dimension_numbers<[1], [0], [0], [1], [0, 0, 1, 1], [], []>} : vector<16x32xf32>, vector<32x128xf32>, vector<16x128xf32> -> vector<16x128xf32>
    %c0_10 = arith.constant 0 : index
    %c0_11 = arith.constant 0 : index
    %c0_12 = arith.constant 0 : index
    %11 = vector.load %arg3[%c0_10, %c0_11, %c0_12] : memref<1x8x4xf32, #tpu.memory_space<vmem>>, vector<1x8x4xf32>
    %12 = vector.shape_cast %11 : vector<1x8x4xf32> to vector<8x4xf32>
    %cst_13 = arith.constant dense<0.000000e+00> : vector<8x32xf32>
    %13 = tpu.matmul %12, %0, %cst_13 {dimension_numbers = #tpu.dot_dimension_numbers<[1], [0], [0], [1], [0, 0, 1, 1], [], []>} : vector<8x4xf32>, vector<4x32xf32>, vector<8x32xf32> -> vector<8x32xf32>
    %14 = vector.broadcast %1 : vector<1x32xf32> to vector<8x32xf32>
    %15 = arith.addf %13, %14 : vector<8x32xf32>
    %cst_14 = arith.constant 0.000000e+00 : f32
    %16 = vector.broadcast %cst_14 : f32 to vector<8x32xf32>
    %17 = arith.maximumf %15, %16 : vector<8x32xf32>
    %cst_15 = arith.constant dense<0.000000e+00> : vector<8x128xf32>
    %18 = tpu.matmul %17, %2, %cst_15 {dimension_numbers = #tpu.dot_dimension_numbers<[1], [0], [0], [1], [0, 0, 1, 1], [], []>} : vector<8x32xf32>, vector<32x128xf32>, vector<8x128xf32> -> vector<8x128xf32>
    %c0_16 = arith.constant 0 : index
    %c0_17 = arith.constant 0 : index
    %19 = vector.load %arg8[%c0_16, %c0_17] : memref<16x16xf32, #tpu.memory_space<vmem>>, vector<16x16xf32>
    %cst_18 = arith.constant dense<0.000000e+00> : vector<16x128xf32>
    %20 = tpu.matmul %19, %10, %cst_18 {dimension_numbers = #tpu.dot_dimension_numbers<[1], [0], [0], [1], [0, 0, 1, 1], [], []>} : vector<16x16xf32>, vector<16x128xf32>, vector<16x128xf32> -> vector<16x128xf32>
    %c0_19 = arith.constant 0 : index
    %c0_20 = arith.constant 0 : index
    %21 = vector.load %arg9[%c0_19, %c0_20] : memref<16x8xf32, #tpu.memory_space<vmem>>, vector<16x8xf32>
    %cst_21 = arith.constant dense<0.000000e+00> : vector<16x128xf32>
    %22 = tpu.matmul %21, %18, %cst_21 {dimension_numbers = #tpu.dot_dimension_numbers<[1], [0], [0], [1], [0, 0, 1, 1], [], []>} : vector<16x8xf32>, vector<8x128xf32>, vector<16x128xf32> -> vector<16x128xf32>
    %23 = arith.addf %20, %22 : vector<16x128xf32>
    %c0_22 = arith.constant 0 : index
    %c0_23 = arith.constant 0 : index
    %24 = vector.load %arg7[%c0_22, %c0_23] : memref<1x128xf32, #tpu.memory_space<vmem>>, vector<1x128xf32>
    %25 = vector.broadcast %24 : vector<1x128xf32> to vector<16x128xf32>
    %26 = arith.addf %23, %25 : vector<16x128xf32>
    %27 = vector.shape_cast %26 : vector<16x128xf32> to vector<1x16x128xf32>
    %c0_24 = arith.constant 0 : index
    %c0_25 = arith.constant 0 : index
    %c0_26 = arith.constant 0 : index
    %28 = vector.load %arg10[%c0_24, %c0_25, %c0_26] : memref<1x16x128xf32, #tpu.memory_space<vmem>>, vector<1x16x128xf32>
    tpu.vector_store %arg10[%c0_24, %c0_25, %c0_26], %27 {strides = array<i32>} : memref<1x16x128xf32, #tpu.memory_space<vmem>>, vector<1x16x128xf32>,
    return
  }
  func.func @transform_0(%arg0: i32, %arg1: i32) -> (i32, i32, i32) {
    %c0_i32 = arith.constant 0 : i32
    %c0_i32_0 = arith.constant 0 : i32
    return %arg0, %arg1, %c0_i32 : i32, i32, i32
  }
  func.func @transform_1(%arg0: i32, %arg1: i32) -> (i32, i32, i32) {
    %c0_i32 = arith.constant 0 : i32
    %c0_i32_0 = arith.constant 0 : i32
    return %arg0, %arg1, %c0_i32 : i32, i32, i32
  }
  func.func @transform_2(%arg0: i32, %arg1: i32) -> (i32, i32) {
    %c0_i32 = arith.constant 0 : i32
    %c0_i32_0 = arith.constant 0 : i32
    %c0_i32_1 = arith.constant 0 : i32
    return %c0_i32, %c0_i32_0 : i32, i32
  }
  func.func @transform_3(%arg0: i32, %arg1: i32) -> (i32, i32) {
    %c0_i32 = arith.constant 0 : i32
    %c0_i32_0 = arith.constant 0 : i32
    %c0_i32_1 = arith.constant 0 : i32
    return %c0_i32, %c0_i32_0 : i32, i32
  }
  func.func @transform_4(%arg0: i32, %arg1: i32) -> (i32, i32) {
    %c0_i32 = arith.constant 0 : i32
    %c0_i32_0 = arith.constant 0 : i32
    %c0_i32_1 = arith.constant 0 : i32
    return %c0_i32, %c0_i32_0 : i32, i32
  }
  func.func @transform_5(%arg0: i32, %arg1: i32) -> (i32, i32) {
    %c0_i32 = arith.constant 0 : i32
    %c0_i32_0 = arith.constant 0 : i32
    %c0_i32_1 = arith.constant 0 : i32
    return %c0_i32, %c0_i32_0 : i32, i32
  }
  func.func @transform_6(%arg0: i32, %arg1: i32) -> (i32, i32) {
    %c0_i32 = arith.constant 0 : i32
    %c0_i32_0 = arith.constant 0 : i32
    %c0_i32_1 = arith.constant 0 : i32
    return %c0_i32, %c0_i32_0 : i32, i32
  }
  func.func @transform_7(%arg0: i32, %arg1: i32) -> (i32, i32) {
    %c0_i32 = arith.constant 0 : i32
    %c0_i32_0 = arith.constant 0 : i32
    %c0_i32_1 = arith.constant 0 : i32
    return %c0_i32, %c0_i32_0 : i32, i32
  }
  func.func @transform_8(%arg0: i32, %arg1: i32) -> (i32, i32, i32) {
    %c0_i32 = arith.constant 0 : i32
    %c0_i32_0 = arith.constant 0 : i32
    return %arg0, %arg1, %c0_i32 : i32, i32, i32
  }
}

</mosaic_0001>

<bundles_post_ra>
// kernel: tpu_custom_call.1
= control target key start
LH: loop header
LB: loop body
LE: loop exit
PB: predicated region body
PF: predicated region fallthrough
CT: control target
= control target key end

     0   :  { %13 = vsyncpa [#allocation3], 0  ;;  %s1446_s0 = inlined_call_operand.vmem [shape: f32[2,32,4], index: 0, kind: input, shape index: {}]   ;;  %s1447_s1 = inlined_call_operand.vmem [shape: f32[2,8,4], index: 1, kind: input, shape index: {}]   ;;  %s1448_s2 = inlined_call_operand.vmem [shape: f32[4,32], index: 2, kind: input, shape index: {}]   ;;  %s1449_s3 = inlined_call_operand.vmem [shape: f32[1,32], index: 3, kind: input, shape index: {}]   ;;  %s1450_s4 = inlined_call_operand.vmem [shape: f32[32,128], index: 4, kind: input, shape index: {}]   ;;  %s1451_s5 = inlined_call_operand.vmem [shape: f32[1,128], index: 5, kind: input, shape index: {}]   ;;  %s1452_s6 = inlined_call_operand.vmem [shape: f32[16,16], index: 6, kind: input, shape index: {}]   ;;  %s1453_s7 = inlined_call_operand.vmem [shape: f32[16,8], index: 7, kind: input, shape index: {}]   ;;  %s1454_s8 = inlined_call_operand.hbm [shape: f32[2,16,128], index: 8, kind: output, shape index: {}]  }
   0x1   :  { %15 = vsyncpa [#allocation3 + $0x1], 0  ;;  %s1292_s27 = smov 0   ;;  %s1294_s28 = smov 0  }
   0x2   :  { %s1296_s29 = smov 0   ;;  %s1298_s30 = smov 0  }
   0x3   :  { %s1300_s9 = smov 0   ;;  %s1302_s10 = smov 0  }
   0x4 LB: > { %s984_s11 = sadd.s32 4294967295, %s1239_s10   ;;  %s985_s12 = sadd.s32 4294967294, %s1239_s10   ;;  %s1239_s10 = sphi %s1302_s10, %s21_s10   ;;  %s1235_s9 = sphi %s1300_s9, %s1461_s9   ;;  %s1231_s30 = sphi %s1298_s30, %s1460_s30   ;;  %s1227_s29 = sphi %s1296_s29, %s1459_s29   ;;  %s1223_s28 = sphi %s1294_s28, %s1458_s28   ;;  %s1219_s27 = sphi %s1292_s27, %s1457_s27  }
   0x5   : > { %s33_s13 = sadd.s32 1, %s1235_s9  ;;  %s224_s14 = sadd.s32 1, %s1227_s29 }
   0x6   : > { %p35_p0 = scmp.ge.s32.totalorder %s33_s13, 2  ;;  %p234_p1 = scmp.ne.s32.totalorder %s1227_s29, %s1223_s28 }
   0x7   : > { %p235_p2 = scmp.eq.s32.totalorder %s984_s11, 1  ;;  %p240_p3 = scmp.ne.s32.totalorder %s1223_s28, %s1219_s27 }
   0x8   : > { %s1463_s13 = smov (%p35_p0, %s33_s13), 0  ;;  %p241_p5 = scmp.eq.s32.totalorder %s985_s12, 1 }
   0x9   : > { %p1332_p4 = por %p235_p2, %p234_p1  ;;  %s219_s16 = ssub.s32 %s1235_s9, %s1463_s13 }
   0xa   : > { %p988_p6 = scmp.ge.s32.totalorder %s1239_s10, 1  ;;  %p222_p7 = scmp.eq.s32.totalorder %s219_s16, 0 }
   0xb   : > { %p1339_p8 = por %p241_p5, %p240_p3  ;;  %p300_p9 = scmp.lt.s32.totalorder %s1239_s10, 3 }
   0xc   : > { %s1345_s18 = scalar_select %p222_p7, %s1227_s29, %s224_s14  }
   0xd   : > { %p301_p10 = pnand %p988_p6, %p300_p9 }
   0xe   : > { %v363_v0 = vld [vmem:[%s1448_s2] sm:$0xf] (!%p301_p10)  ;;  %vm384_vm0 = vcmask (!%p301_p10), 1043456   ;;  %p346_p11 = scmp.lt.s32.totalorder (!%p301_p10), %s1231_s30, 1  ;;  %v366_v2 = vld [vmem:[%s1450_s4 + $0x8] sm:$0xff] (!%p301_p10)  ;;  %v1241_v4 = vmov (!%p301_p10), 0.0  }
   0xf   : > { %304 = sbr.rel (%p301_p10) target bundleno = 700 (0x2bc), region = 52  ;;  %1037 = vmatprep.subr.msk.mxu0 (!%p301_p10), %vm384_vm0, %v363_v0  ;;  %v365_v1 = vld [vmem:[%s1450_s4] sm:$0xff] (!%p301_p10)  ;;  %vm377_vm1 = vcmask (!%p301_p10), 31744   ;;  %vm1242_vm2 = vmmov (!%p301_p10), 0   ;;  %v367_v8 = vld [vmem:[%s1450_s4 + $0x10] sm:$0xff] (!%p301_p10)  ;;  %v368_v9 = vld [vmem:[%s1450_s4 + $0x18] sm:$0xff] (!%p301_p10) }
  0x10   : > { %1038 = vmatpush3.msk.msra.mxu0 (!%p301_p10), %vm384_vm0, %v363_v0  ;;  %v1081_v3 = vpack.c.bf16 (!%p301_p10), %v366_v2, %v365_v1  ;;  %v1243_v10 = vmov (!%p301_p10), 0.0|0.0   ;;  %v1085_v11 = vpack.c.bf16 (!%p301_p10), %v368_v9, %v367_v8  ;;  %v993_v12 = vld [vmem:[%s1449_s3] ss:$0 sm:$0xff] (!%p301_p10)  ;;  %vm465_vm3 = vcmask (!%p301_p10), 261120   ;;  %v698_v28 = vld [vmem:[%s1453_s7 + $0x8] sm:$0xff] (!%p301_p10)  ;;  %s342_s24 = sand.u32 (!%p301_p10), 1, %s1223_s28  }
  0x11   : > { %1053 = vmatprep.subr.mxu0 (!%p301_p10), %v1241_v4  ;;  %v697_v23 = vld [vmem:[%s1453_s7] sm:$0xff] (!%p301_p10)  ;;  %vm699_vm4 = vcmask (!%p301_p10), 64512   ;;  %vm781_vm5 = vcmask (!%p301_p10), 130048   ;;  %v696_v31 = vld [vmem:[%s1452_s6 + $0x8] sm:$0xff] (!%p301_p10)  ;;  %s1400_s22 = scalar_lea.sflag (!%p301_p10), [#allocation3], %s342_s24 }
  0x12   : > { %1082 = vmatprep.subr.bf16.mxu1 (!%p301_p10), %v1081_v3  ;;  %v695_v30 = vld [vmem:[%s1452_s6] sm:$0xff] (!%p301_p10) }
  0x13   : > { %1084 = vmatpush3.bf16.msra.mxu1 (!%p301_p10), %v1081_v3  ;;  %v1006_v32 = vld [vmem:[%s1451_s5] ss:$0 sm:$0xff] (!%p301_p10) }
  0x14   : > { %1086 = vmatprep.subr.bf16.mxu1 (!%p301_p10), %v1085_v11 }
  0x16   : > { %s347_s25 = scalar_select %p346_p11, %s1231_s30, 1 }
  0x17   : > { %1088 = vmatpush3.bf16.msra.mxu1 %v1085_v11 }
  0x18   : > { %s1012_s26 = sshll.u32 %s347_s25, 5  ;;  %s992_s11 = sshll.u32 %s347_s25, 3 }
  0x19   : > { %s353_s16 = scalar_lea.vmem %s1446_s0, %s1012_s26  ;;  %s361_s21 = scalar_lea.vmem %s1447_s1, %s992_s11 }
  0x1a   : > { %v369_v5 = vld [vmem:[%s353_s16] sm:$0xff]  ;;  %v370_v6 = vld [vmem:[%s353_s16 + $0x8] sm:$0xff]  ;;  %s989_s25 = sshll.u32 %s342_s24, 4  ;;  %s1013_s16 = sshll.u32 %s1231_s30, 8 }
  0x1b   : > { %1039 = vmatprep.mubr.msk.f32.mxu0 %vm377_vm1, %v369_v5  ;;  %v547_v7 = vld [vmem:[%s361_s21] sm:$0xff]  ;;  %s344_s12 = scalar_lea.vmem [#allocation2], %s989_s25  ;;  %s1398_s21 = scalar_lea.hbm %s1454_s8, %s1013_s16 }
  0x1c   : > { %1040 = vmatmul.mubr.msk.f32.vlgmr.msra.gmra.mrb[0].mxu0 %vm377_vm1, %v370_v6  ;;  %s890_s14 = sshll.u32 %s344_s12, 4  ;;  %s1244_s30 = smov [#allocation2]   ;;  %s1393_s14 = int_to_ptr.vmem [resolvable:$true] %s890_s14 }
  0x1d   : > { %1054 = vmatpush3.msk.msra.mxu0 %vm384_vm0, %v363_v0  ;;  %1055 = vmatprep.mubr.msk.f32.mxu0 %vm1242_vm2, %v1241_v4  ;;  %s1161_s23 = scalar_lea.vmem %s1393_s14, 256  ;;  %s1165_s25 = sshll.u32 %s1244_s30, 4  ;;  %s1166_s25 = int_to_ptr.vmem [resolvable:$false] %s1165_s25 }
  0x1e   : > { %1089 = vmatprep.subr.bf16.mxu0 %v1243_v10  ;;  %p1162_p12 = scmp.ne.s32.totalorder %s1393_s14, %s1161_s23  ;;  %s1167_s26 = scalar_lea.vmem %s1166_s25, 512 }
  0x1f   : > { %p1168_p1 = scmp.lt.s32.totalorder %s1393_s14, %s1166_s25  ;;  %p1169_p2 = scmp.lt.s32.totalorder %s1167_s26, %s1161_s23 }
  0x20   : > { %1056 = vmatmul.mubr.msk.f32.vlgmr.msra.gmra.mrb[2].mxu0 %vm377_vm1, %v547_v7  ;;  %p1163_p13 = pnand %p1162_p12, %p1332_p4 }
  0x21   : > { %1066 = vmatprep.mubr.msk.f32.mxu0 %vm1242_vm2, %v1241_v4  ;;  %1091 = vmatpush3.bf16.msra.mxu0 %v1081_v3  ;;  %p1170_p3 = por %p1169_p2, %p1168_p1 }
  0x22   : > { %1092 = vmatprep.subr.bf16.mxu0 %v1243_v10  ;;  %p1164_p0 = pneg %p1163_p13 }
  0x24   : > { %p1171_p5 = pnand %p1170_p3, %p1164_p0 }
  0x25   : > { %1094 = vmatpush3.bf16.msra.mxu0 %v1085_v11 }
  0xef   : > { %v1041_v13 = vpop.f32.mrb[0].mxu0 }
  0xf0   : > { %v460_v14 = vadd.f32 %v1041_v13, %v993_v12  ;;  %v454_v15 = vpop.f32.mrb[1].mxu0 }
  0xf1   : > { %v455_v16 = vadd.f32 %v993_v12, %v454_v15 }
  0xf2   : > { %v464_v19 = vmax.f32 %v460_v14, 0.0 }
  0xf3   : > { %v463_v17 = vmax.f32 %v455_v16, 0.0  ;;  %v617_v18 = vpop.f32.mrb[2].mxu0 }
  0xf4   : > { %v618_v20 = vadd.f32 %v993_v12, %v617_v18  ;;  %v1057_v21 = vpop.f32.mrb[3].mxu0 }
  0xf5   : > { %1050 = vmatprep.mubr.msk.f32.mxu1 %vm465_vm3, %v463_v17 }
  0xf6   : > { %v621_v22 = vmax.f32 %v618_v20, 0.0  ;;  %1051 = vmatmul.mubr.msk.f32.vlgmr.msra.gmra.mrb[0].mxu1 %vm465_vm3, %v464_v19 }
  0xf7   : > { %1071 = vmatprep.mubr.msk.f32.mxu1 %vm699_vm4, %v697_v23 }
  0xf8   : > { %1067 = vmatmul.mubr.msk.f32.vlgmr.msra.gmra.mrb[4].mxu0 %vm465_vm3, %v621_v22 }
 0x1c9   : > { %v1052_v24 = vpop.f32.mrb[0].mxu1 }
 0x1ca   : > { %v538_v25 = vpop.f32.mrb[1].mxu1 }
 0x1cb   : > { %v1095_v26 = vpack.c.bf16 %v1052_v24, %v538_v25  ;;  %v691_v27 = vpop.f32.mrb[4].mxu0 }
 0x1cc   : > { %v1068_v29 = vpop.f32.mrb[5].mxu0  ;;  %1069 = vmatprep.subr.mxu1 %v691_v27 }
 0x1cd   : > { %1070 = vmatpush3.msra.mxu1 %v691_v27 }
 0x1ce   : > { %1072 = vmatmul.mubr.msk.f32.vlgmr.msra.gmra.mrb[2].mxu1 %vm699_vm4, %v698_v28  ;;  %1096 = vmatprep.subr.bf16.mxu1 %v1095_v26 }
 0x1cf   : > { %1098 = vmatpush3.bf16.msra.mxu1 %v1095_v26  ;;  %1078 = vmatprep.mubr.msk.f32.mxu1 %vm781_vm5, %v695_v30 }
 0x1d6   : > { %1079 = vmatmul.mubr.msk.f32.vlgmr.msra.gmra.mrb[2].mxu1 %vm781_vm5, %v696_v31 }
 0x2a9   : > { %v1080_v33 = vpop.f32.mrb[2].mxu1 }
 0x2aa   : > { %v871_v34 = vadd.f32 %v1080_v33, %v1006_v32  ;;  %v854_v35 = vpop.f32.mrb[3].mxu1 }
 0x2ab   : > { %v870_v36 = vadd.f32 %v1006_v32, %v854_v35 }
 0x2ac   : > { %873 = vst [vmem:[%s344_s12 + $0x8] sm:$0xff] %v871_v34 }
 0x2ad   : > { %872 = vst [vmem:[%s344_s12] sm:$0xff] %v870_v36 }
 0x2ae   : > { %1174 = shalt.err (!%p1171_p5)
}
 0x2af   : > { %s1175_s24 = scalar_lea.hbm %s1398_s21, 256  ;;  %s1179_s16 = scalar_lea.hbm %s1454_s8, 512 }
 0x2b0   : > { %p1176_p6 = scmp.ne.s32.totalorder %s1398_s21, %s1175_s24  ;;  %p1180_p10 = scmp.lt.u32.totalorder %s1398_s21, %s1454_s8 }
 0x2b1   : > { %p1181_p11 = scmp.lt.u32.totalorder %s1179_s16, %s1175_s24  ;;  %p1183_p13 = scmp.lt.u32.totalorder %s1175_s24, %s1398_s21 }
 0x2b2   : > { %p1177_p7 = pnand %p1176_p6, %p1332_p4 }
 0x2b3   : > { %p1182_p12 = por %p1181_p11, %p1180_p10 }
 0x2b4   : > { %p1178_p9 = pneg %p1177_p7 }
 0x2b5   : > { %p1184_p0 = por %p1183_p13, %p1182_p12 }
 0x2b7   : > { %p1185_p1 = pnand %p1184_p0, %p1178_p9 }
 0x2b9   : > { %1188 = shalt.err (!%p1185_p1)
}
 0x2ba   : > { %s1245_s23 = smov 128   ;;  %s1246_s30 = smov 8  }
 0x2bb   : > { %1101 = dma.vmem_to_hbm [thread:$0]  (%p1332_p4), %s1393_s14, 256, %s1398_s21, %s1400_s22, %s1245_s23, %s1245_s23, %s1246_s30  }
 0x2bc PF: > { %p1107_p2 = scmp.ge.s32.totalorder %s1239_s10, 2  ;;  %s905_s25 = sand.u32 1, %s1219_s27  }
 0x2bd   : > { %s906_s26 = scalar_lea.sflag [#allocation3], %s905_s25 }
 0x2be   : > { %p1104_p3 = pnand %p1107_p2, %p1339_p8 }
 0x2c0   : > { %1214 = dma.done.wait (!%p1104_p3), %s906_s26, 256  }
 0x2c1   : > { %1216 = vsyncadd (!%p1104_p3), %s906_s26, 4294967040  ;;  %s21_s10 = sadd.s32 1, %s1239_s10   ;;  %s1457_s27 = smov %s1223_s28 }
 0x2c2   : > { %p18_p5 = scmp.ge.s32.totalorder %s21_s10, 4   ;;  %s1458_s28 = smov %s1227_s29 }
 0x2c3   : > { %s1459_s29 = smov %s1345_s18  ;;  %s1460_s30 = smov %s1235_s9 }
 0x2c4   : > { %s1461_s9 = smov %s1463_s13  ;;  %20 = sbr.rel (!%p18_p5) target bundleno = 4 (0x4), region = 90 }
 0x2cb   :  { %911 = vsyncpa [#allocation3], 1 }
 0x2cc   :  { %913 = vsyncpa [#allocation3 + $0x1], 1 }

</bundles_post_ra>
